<compile_context>
chip_gen: v5e
topology: v5e:2x2
jax: 0.10.0
libtpu: 0.0.40
codegen_flags: <defaults>
</compile_context>

<pallas_src>
import functools

import jax
import jax.numpy as jnp
import numpy as np
from jax.experimental import pallas as pl
from jax.experimental.pallas import tpu as pltpu


def encoder_kernel(x_ref, w_ih_ref, w_hh_ref, b_g_ref, b_hn_ref,
                   w_lin_ref, b_lin_ref, o_ref, *, seq_len, batch_pad, hidden):
    """Whole GRU + Linear in one kernel invocation.

    x_ref:      (S*Bp, I)   all time steps, flattened (row t*Bp + b == inp[t, b])
    w_ih_ref:   (I, 3H)     fused input->hidden weights, lane order r|z|n (bf16)
    w_hh_ref:   (H, 3H)     fused hidden->hidden weights, lane order r|z|n (bf16)
    b_g_ref:    (1, 3H)     [b_ir + b_hr | b_iz + b_hz | b_in]  (f32)
    b_hn_ref:   (1, H)      b_hn (kept separate: it is multiplied by r)
    w_lin_ref:  (H, O)      Linear weight, pre-transposed (bf16)
    b_lin_ref:  (1, O)      (f32)
    o_ref:      (S*Bp, O)
    """
    S, Bp, H = seq_len, batch_pad, hidden

    # Hoisted input->gate matmul: ONE (S*Bp, I) @ (I, 3H) MXU push for all
    # time steps and all three gates, r/z biases already folded in.
    x = x_ref[...].astype(jnp.bfloat16)                       # (S*Bp, I)
    gi = jnp.dot(x, w_ih_ref[...],
                 preferred_element_type=jnp.float32) + b_g_ref[...]   # (S*Bp, 3H) f32

    w_hh = w_hh_ref[...]                                      # (H, 3H) bf16
    b_hn = b_hn_ref[...]                                      # (1, H)  f32

    # Sequential recurrence, fully unrolled (S is small & static). The hidden
    # state h lives in vregs; only ONE fused (Bp, H) @ (H, 3H) matmul remains
    # inside the serial chain per step.
    h = jnp.zeros((Bp, H), dtype=jnp.float32)
    hs = []
    for t in range(S):
        lo = t * Bp                                           # multiple of 8 -> tile aligned
        gi_t = gi[lo:lo + Bp]                                 # (Bp, 3H)
        gh = jnp.dot(h.astype(jnp.bfloat16), w_hh,
                     preferred_element_type=jnp.float32)      # (Bp, 3H)
        rz = jax.nn.sigmoid(gi_t[:, :2 * H] + gh[:, :2 * H])  # fused r|z EUP stream
        r = rz[:, :H]
        z = rz[:, H:2 * H]
        n = jnp.tanh(gi_t[:, 2 * H:] + r * (gh[:, 2 * H:] + b_hn))
        h = (1.0 - z) * n + z * h
        hs.append(h)

    # Hidden states never leave vregs: concatenate and do ONE batched output
    # projection + ONE store for all S time steps.
    hs_all = jnp.concatenate(hs, axis=0)                      # (S*Bp, H) f32
    out = jnp.dot(hs_all.astype(jnp.bfloat16), w_lin_ref[...],
                  preferred_element_type=jnp.float32) + b_lin_ref[...]
    o_ref[...] = out.astype(o_ref.dtype)


def encoder_forward(x, w_ih, w_hh, b_ih, b_hh, w_lin, b_lin):
    """x: (S, B, I); weights in PyTorch layout (w_ih: (3H, I), w_hh: (3H, H),
    w_lin: (O, H)). Fusion / transposition / bias folding / batch padding is
    plain-JAX glue done once outside the kernel."""
    S, B, I = x.shape
    H = w_hh.shape[1]
    O = w_lin.shape[0]
    Bp = ((B + 7) // 8) * 8                       # pad batch to a full sublane tile

    # Fused (K, 3H) weights, lane order r|z|n (PyTorch rows are [W_r; W_z; W_n]).
    w_ih_cat = jnp.transpose(w_ih).astype(jnp.bfloat16)       # (I, 3H)
    w_hh_cat = jnp.transpose(w_hh).astype(jnp.bfloat16)       # (H, 3H)

    # Fused gate bias: r/z get b_ih + b_hh folded; n keeps only b_in here
    # (b_hn must stay inside r * (W_hn h + b_hn)).
    b_g = jnp.concatenate(
        [b_ih[:2 * H] + b_hh[:2 * H], b_ih[2 * H:3 * H]]).reshape(1, 3 * H)
    b_hn = b_hh[2 * H:3 * H].reshape(1, H)

    w_lin_t = jnp.transpose(w_lin).astype(jnp.bfloat16)       # (H, O)
    b_lin2 = b_lin.reshape(1, O)

    # Zero-pad batch to Bp rows and flatten time-major: row t*Bp + b == x[t, b].
    x_pad = jnp.pad(x, ((0, 0), (0, Bp - B), (0, 0)))
    x_flat = x_pad.reshape(S * Bp, I)

    kernel = functools.partial(encoder_kernel, seq_len=S, batch_pad=Bp, hidden=H)

    out_flat = pl.pallas_call(
        kernel,
        out_shape=jax.ShapeDtypeStruct((S * Bp, O), x.dtype),
        grid_spec=pltpu.PrefetchScalarGridSpec(
            num_scalar_prefetch=0,
            grid=(1,),                            # single invocation; loop is in-kernel
            in_specs=[
                pl.BlockSpec((S * Bp, I), lambda i: (0, 0)),
                pl.BlockSpec((I, 3 * H), lambda i: (0, 0)),
                pl.BlockSpec((H, 3 * H), lambda i: (0, 0)),
                pl.BlockSpec((1, 3 * H), lambda i: (0, 0)),
                pl.BlockSpec((1, H), lambda i: (0, 0)),
                pl.BlockSpec((H, O), lambda i: (0, 0)),
                pl.BlockSpec((1, O), lambda i: (0, 0)),
            ],
            out_specs=pl.BlockSpec((S * Bp, O), lambda i: (0, 0)),
        ),
        compiler_params=pltpu.CompilerParams(
            dimension_semantics=("arbitrary",)),   # recurrence is serial
    )(x_flat, w_ih_cat, w_hh_cat, b_g, b_hn, w_lin_t, b_lin2)

    return out_flat.reshape(S, Bp, O)[:, :B, :]


def encoder_reference(x, w_ih, w_hh, b_ih, b_hh, w_lin, b_lin):
    """Pure-JAX f32 reference matching torch.nn.GRU + nn.Linear semantics."""
    S, B, I = x.shape
    H = w_hh.shape[1]

    def step(h, xt):
        gi = xt @ w_ih.T + b_ih
        gh = h @ w_hh.T + b_hh
        r = jax.nn.sigmoid(gi[:, :H] + gh[:, :H])
        z = jax.nn.sigmoid(gi[:, H:2 * H] + gh[:, H:2 * H])
        n = jnp.tanh(gi[:, 2 * H:] + r * gh[:, 2 * H:])
        h_new = (1.0 - z) * n + z * h
        return h_new, h_new

    h0 = jnp.zeros((B, H), jnp.float32)
    _, hs = jax.lax.scan(step, h0, x)
    return hs @ w_lin.T + b_lin


if __name__ == "__main__":
    # Small shapes consistent with the module: seq=8, batch=4,
    # input_size=16, hidden_size=32, output_size=16.
    S, B, I, H, O = 8, 4, 16, 32, 16

    key = jax.random.PRNGKey(0)
    ks = jax.random.split(key, 8)

    # Deterministic init mimicking PyTorch's U(-1/sqrt(H), 1/sqrt(H)).
    bound = 1.0 / np.sqrt(H)
    w_ih = jax.random.uniform(ks[0], (3 * H, I), jnp.float32, -bound, bound)
    w_hh = jax.random.uniform(ks[1], (3 * H, H), jnp.float32, -bound, bound)
    b_ih = jax.random.uniform(ks[2], (3 * H,), jnp.float32, -bound, bound)
    b_hh = jax.random.uniform(ks[3], (3 * H,), jnp.float32, -bound, bound)
    w_lin = jax.random.uniform(ks[4], (O, H), jnp.float32, -bound, bound)
    b_lin = jax.random.uniform(ks[5], (O,), jnp.float32, -bound, bound)

    inp = jax.random.normal(ks[6], (S, B, I), jnp.float32)

    out = encoder_forward(inp, w_ih, w_hh, b_ih, b_hh, w_lin, b_lin)
    out = jax.block_until_ready(out)

    ref = encoder_reference(inp, w_ih, w_hh, b_ih, b_hh, w_lin, b_lin)
    ref = jax.block_until_ready(ref)

    # bf16 matmul operands (f32 accumulation / f32 gate math) -> loosened
    # tolerance vs. the pure-f32 reference.
    np.testing.assert_allclose(np.asarray(out), np.asarray(ref),
                               rtol=2e-2, atol=2e-2)
    print("KERNEL_OK")
</pallas_src>

<mosaic_0001>
module attributes {stable_mosaic.version = 11 : i64} {
  func.func @encoder_kernel(%arg0: i32, %arg1: memref<64x16xf32, #tpu.memory_space<vmem>>, %arg2: memref<16x96xbf16, #tpu.memory_space<vmem>>, %arg3: memref<32x96xbf16, #tpu.memory_space<vmem>>, %arg4: memref<1x96xf32, #tpu.memory_space<vmem>>, %arg5: memref<1x32xf32, #tpu.memory_space<vmem>>, %arg6: memref<32x16xbf16, #tpu.memory_space<vmem>>, %arg7: memref<1x16xf32, #tpu.memory_space<vmem>>, %arg8: memref<64x16xf32, #tpu.memory_space<vmem>>) attributes {dimension_semantics = [#tpu.dimension_semantics<arbitrary>], iteration_bounds = array<i64: 1>, scalar_prefetch = 0 : i64, scratch_operands = 0 : i64, tpu.core_type = #tpu.core_type<tc>, window_params = [{pipeline_mode = #tpu.pipeline_mode<synchronous>, transform_indices = @transform_0, window_bounds = array<i64: 64, 16>}, {pipeline_mode = #tpu.pipeline_mode<synchronous>, transform_indices = @transform_1, window_bounds = array<i64: 16, 96>}, {pipeline_mode = #tpu.pipeline_mode<synchronous>, transform_indices = @transform_2, window_bounds = array<i64: 32, 96>}, {pipeline_mode = #tpu.pipeline_mode<synchronous>, transform_indices = @transform_3, window_bounds = array<i64: 1, 96>}, {pipeline_mode = #tpu.pipeline_mode<synchronous>, transform_indices = @transform_4, window_bounds = array<i64: 1, 32>}, {pipeline_mode = #tpu.pipeline_mode<synchronous>, transform_indices = @transform_5, window_bounds = array<i64: 32, 16>}, {pipeline_mode = #tpu.pipeline_mode<synchronous>, transform_indices = @transform_6, window_bounds = array<i64: 1, 16>}, {pipeline_mode = #tpu.pipeline_mode<synchronous>, transform_indices = @transform_7, window_bounds = array<i64: 64, 16>}]} {
    %c0 = arith.constant 0 : index
    %c0_0 = arith.constant 0 : index
    %0 = vector.load %arg1[%c0, %c0_0] : memref<64x16xf32, #tpu.memory_space<vmem>>, vector<64x16xf32>
    %1 = arith.truncf %0 : vector<64x16xf32> to vector<64x16xbf16>
    %c0_1 = arith.constant 0 : index
    %c0_2 = arith.constant 0 : index
    %2 = vector.load %arg2[%c0_1, %c0_2] : memref<16x96xbf16, #tpu.memory_space<vmem>>, vector<16x96xbf16>
    %cst = arith.constant dense<0.000000e+00> : vector<64x96xf32>
    %3 = tpu.matmul %1, %2, %cst {dimension_numbers = #tpu.dot_dimension_numbers<[1], [0], [0], [1], [0, 0, 1, 1], [], []>} : vector<64x16xbf16>, vector<16x96xbf16>, vector<64x96xf32> -> vector<64x96xf32>
    %c0_3 = arith.constant 0 : index
    %c0_4 = arith.constant 0 : index
    %4 = vector.load %arg4[%c0_3, %c0_4] : memref<1x96xf32, #tpu.memory_space<vmem>>, vector<1x96xf32>
    %5 = vector.broadcast %4 : vector<1x96xf32> to vector<64x96xf32>
    %6 = arith.addf %3, %5 : vector<64x96xf32>
    %c0_5 = arith.constant 0 : index
    %c0_6 = arith.constant 0 : index
    %7 = vector.load %arg3[%c0_5, %c0_6] : memref<32x96xbf16, #tpu.memory_space<vmem>>, vector<32x96xbf16>
    %c0_7 = arith.constant 0 : index
    %c0_8 = arith.constant 0 : index
    %8 = vector.load %arg5[%c0_7, %c0_8] : memref<1x32xf32, #tpu.memory_space<vmem>>, vector<1x32xf32>
    %cst_9 = arith.constant 0.000000e+00 : f32
    %9 = vector.broadcast %cst_9 : f32 to vector<8x32xf32>
    %10 = vector.extract_strided_slice %6 {offsets = [0, 0], sizes = [8, 96], strides = [1, 1]} : vector<64x96xf32> to vector<8x96xf32>
    %11 = arith.truncf %9 : vector<8x32xf32> to vector<8x32xbf16>
    %cst_10 = arith.constant dense<0.000000e+00> : vector<8x96xf32>
    %12 = tpu.matmul %11, %7, %cst_10 {dimension_numbers = #tpu.dot_dimension_numbers<[1], [0], [0], [1], [0, 0, 1, 1], [], []>} : vector<8x32xbf16>, vector<32x96xbf16>, vector<8x96xf32> -> vector<8x96xf32>
    %13 = vector.extract_strided_slice %10 {offsets = [0, 0], sizes = [8, 64], strides = [1, 1]} : vector<8x96xf32> to vector<8x64xf32>
    %14 = vector.extract_strided_slice %12 {offsets = [0, 0], sizes = [8, 64], strides = [1, 1]} : vector<8x96xf32> to vector<8x64xf32>
    %15 = arith.addf %13, %14 : vector<8x64xf32>
    %16 = arith.negf %15 : vector<8x64xf32>
    %17 = math.exp %16 : vector<8x64xf32>
    %cst_11 = arith.constant 1.000000e+00 : f32
    %18 = vector.broadcast %cst_11 : f32 to vector<8x64xf32>
    %19 = arith.addf %18, %17 : vector<8x64xf32>
    %20 = arith.divf %18, %19 : vector<8x64xf32>
    %21 = vector.extract_strided_slice %20 {offsets = [0, 0], sizes = [8, 32], strides = [1, 1]} : vector<8x64xf32> to vector<8x32xf32>
    %22 = vector.extract_strided_slice %20 {offsets = [0, 32], sizes = [8, 32], strides = [1, 1]} : vector<8x64xf32> to vector<8x32xf32>
    %23 = vector.extract_strided_slice %10 {offsets = [0, 64], sizes = [8, 32], strides = [1, 1]} : vector<8x96xf32> to vector<8x32xf32>
    %24 = vector.extract_strided_slice %12 {offsets = [0, 64], sizes = [8, 32], strides = [1, 1]} : vector<8x96xf32> to vector<8x32xf32>
    %25 = vector.broadcast %8 : vector<1x32xf32> to vector<8x32xf32>
    %26 = arith.addf %24, %25 : vector<8x32xf32>
    %27 = arith.mulf %21, %26 : vector<8x32xf32>
    %28 = arith.addf %23, %27 : vector<8x32xf32>
    %29 = math.tanh %28 : vector<8x32xf32>
    %cst_12 = arith.constant 1.000000e+00 : f32
    %30 = vector.broadcast %cst_12 : f32 to vector<8x32xf32>
    %31 = arith.subf %30, %22 : vector<8x32xf32>
    %32 = arith.mulf %31, %29 : vector<8x32xf32>
    %33 = arith.mulf %22, %9 : vector<8x32xf32>
    %34 = arith.addf %32, %33 : vector<8x32xf32>
    %35 = vector.extract_strided_slice %6 {offsets = [8, 0], sizes = [8, 96], strides = [1, 1]} : vector<64x96xf32> to vector<8x96xf32>
    %36 = arith.truncf %34 : vector<8x32xf32> to vector<8x32xbf16>
    %cst_13 = arith.constant dense<0.000000e+00> : vector<8x96xf32>
    %37 = tpu.matmul %36, %7, %cst_13 {dimension_numbers = #tpu.dot_dimension_numbers<[1], [0], [0], [1], [0, 0, 1, 1], [], []>} : vector<8x32xbf16>, vector<32x96xbf16>, vector<8x96xf32> -> vector<8x96xf32>
    %38 = vector.extract_strided_slice %35 {offsets = [0, 0], sizes = [8, 64], strides = [1, 1]} : vector<8x96xf32> to vector<8x64xf32>
    %39 = vector.extract_strided_slice %37 {offsets = [0, 0], sizes = [8, 64], strides = [1, 1]} : vector<8x96xf32> to vector<8x64xf32>
    %40 = arith.addf %38, %39 : vector<8x64xf32>
    %41 = arith.negf %40 : vector<8x64xf32>
    %42 = math.exp %41 : vector<8x64xf32>
    %cst_14 = arith.constant 1.000000e+00 : f32
    %43 = vector.broadcast %cst_14 : f32 to vector<8x64xf32>
    %44 = arith.addf %43, %42 : vector<8x64xf32>
    %45 = arith.divf %43, %44 : vector<8x64xf32>
    %46 = vector.extract_strided_slice %45 {offsets = [0, 0], sizes = [8, 32], strides = [1, 1]} : vector<8x64xf32> to vector<8x32xf32>
    %47 = vector.extract_strided_slice %45 {offsets = [0, 32], sizes = [8, 32], strides = [1, 1]} : vector<8x64xf32> to vector<8x32xf32>
    %48 = vector.extract_strided_slice %35 {offsets = [0, 64], sizes = [8, 32], strides = [1, 1]} : vector<8x96xf32> to vector<8x32xf32>
    %49 = vector.extract_strided_slice %37 {offsets = [0, 64], sizes = [8, 32], strides = [1, 1]} : vector<8x96xf32> to vector<8x32xf32>
    %50 = vector.broadcast %8 : vector<1x32xf32> to vector<8x32xf32>
    %51 = arith.addf %49, %50 : vector<8x32xf32>
    %52 = arith.mulf %46, %51 : vector<8x32xf32>
    %53 = arith.addf %48, %52 : vector<8x32xf32>
    %54 = math.tanh %53 : vector<8x32xf32>
    %cst_15 = arith.constant 1.000000e+00 : f32
    %55 = vector.broadcast %cst_15 : f32 to vector<8x32xf32>
    %56 = arith.subf %55, %47 : vector<8x32xf32>
    %57 = arith.mulf %56, %54 : vector<8x32xf32>
    %58 = arith.mulf %47, %34 : vector<8x32xf32>
    %59 = arith.addf %57, %58 : vector<8x32xf32>
    %60 = vector.extract_strided_slice %6 {offsets = [16, 0], sizes = [8, 96], strides = [1, 1]} : vector<64x96xf32> to vector<8x96xf32>
    %61 = arith.truncf %59 : vector<8x32xf32> to vector<8x32xbf16>
    %cst_16 = arith.constant dense<0.000000e+00> : vector<8x96xf32>
    %62 = tpu.matmul %61, %7, %cst_16 {dimension_numbers = #tpu.dot_dimension_numbers<[1], [0], [0], [1], [0, 0, 1, 1], [], []>} : vector<8x32xbf16>, vector<32x96xbf16>, vector<8x96xf32> -> vector<8x96xf32>
    %63 = vector.extract_strided_slice %60 {offsets = [0, 0], sizes = [8, 64], strides = [1, 1]} : vector<8x96xf32> to vector<8x64xf32>
    %64 = vector.extract_strided_slice %62 {offsets = [0, 0], sizes = [8, 64], strides = [1, 1]} : vector<8x96xf32> to vector<8x64xf32>
    %65 = arith.addf %63, %64 : vector<8x64xf32>
    %66 = arith.negf %65 : vector<8x64xf32>
    %67 = math.exp %66 : vector<8x64xf32>
    %cst_17 = arith.constant 1.000000e+00 : f32
    %68 = vector.broadcast %cst_17 : f32 to vector<8x64xf32>
    %69 = arith.addf %68, %67 : vector<8x64xf32>
    %70 = arith.divf %68, %69 : vector<8x64xf32>
    %71 = vector.extract_strided_slice %70 {offsets = [0, 0], sizes = [8, 32], strides = [1, 1]} : vector<8x64xf32> to vector<8x32xf32>
    %72 = vector.extract_strided_slice %70 {offsets = [0, 32], sizes = [8, 32], strides = [1, 1]} : vector<8x64xf32> to vector<8x32xf32>
    %73 = vector.extract_strided_slice %60 {offsets = [0, 64], sizes = [8, 32], strides = [1, 1]} : vector<8x96xf32> to vector<8x32xf32>
    %74 = vector.extract_strided_slice %62 {offsets = [0, 64], sizes = [8, 32], strides = [1, 1]} : vector<8x96xf32> to vector<8x32xf32>
    %75 = vector.broadcast %8 : vector<1x32xf32> to vector<8x32xf32>
    %76 = arith.addf %74, %75 : vector<8x32xf32>
    %77 = arith.mulf %71, %76 : vector<8x32xf32>
    %78 = arith.addf %73, %77 : vector<8x32xf32>
    %79 = math.tanh %78 : vector<8x32xf32>
    %cst_18 = arith.constant 1.000000e+00 : f32
    %80 = vector.broadcast %cst_18 : f32 to vector<8x32xf32>
    %81 = arith.subf %80, %72 : vector<8x32xf32>
    %82 = arith.mulf %81, %79 : vector<8x32xf32>
    %83 = arith.mulf %72, %59 : vector<8x32xf32>
    %84 = arith.addf %82, %83 : vector<8x32xf32>
    %85 = vector.extract_strided_slice %6 {offsets = [24, 0], sizes = [8, 96], strides = [1, 1]} : vector<64x96xf32> to vector<8x96xf32>
    %86 = arith.truncf %84 : vector<8x32xf32> to vector<8x32xbf16>
    %cst_19 = arith.constant dense<0.000000e+00> : vector<8x96xf32>
    %87 = tpu.matmul %86, %7, %cst_19 {dimension_numbers = #tpu.dot_dimension_numbers<[1], [0], [0], [1], [0, 0, 1, 1], [], []>} : vector<8x32xbf16>, vector<32x96xbf16>, vector<8x96xf32> -> vector<8x96xf32>
    %88 = vector.extract_strided_slice %85 {offsets = [0, 0], sizes = [8, 64], strides = [1, 1]} : vector<8x96xf32> to vector<8x64xf32>
    %89 = vector.extract_strided_slice %87 {offsets = [0, 0], sizes = [8, 64], strides = [1, 1]} : vector<8x96xf32> to vector<8x64xf32>
    %90 = arith.addf %88, %89 : vector<8x64xf32>
    %91 = arith.negf %90 : vector<8x64xf32>
    %92 = math.exp %91 : vector<8x64xf32>
    %cst_20 = arith.constant 1.000000e+00 : f32
    %93 = vector.broadcast %cst_20 : f32 to vector<8x64xf32>
    %94 = arith.addf %93, %92 : vector<8x64xf32>
    %95 = arith.divf %93, %94 : vector<8x64xf32>
    %96 = vector.extract_strided_slice %95 {offsets = [0, 0], sizes = [8, 32], strides = [1, 1]} : vector<8x64xf32> to vector<8x32xf32>
    %97 = vector.extract_strided_slice %95 {offsets = [0, 32], sizes = [8, 32], strides = [1, 1]} : vector<8x64xf32> to vector<8x32xf32>
    %98 = vector.extract_strided_slice %85 {offsets = [0, 64], sizes = [8, 32], strides = [1, 1]} : vector<8x96xf32> to vector<8x32xf32>
    %99 = vector.extract_strided_slice %87 {offsets = [0, 64], sizes = [8, 32], strides = [1, 1]} : vector<8x96xf32> to vector<8x32xf32>
    %100 = vector.broadcast %8 : vector<1x32xf32> to vector<8x32xf32>
    %101 = arith.addf %99, %100 : vector<8x32xf32>
    %102 = arith.mulf %96, %101 : vector<8x32xf32>
    %103 = arith.addf %98, %102 : vector<8x32xf32>
    %104 = math.tanh %103 : vector<8x32xf32>
    %cst_21 = arith.constant 1.000000e+00 : f32
    %105 = vector.broadcast %cst_21 : f32 to vector<8x32xf32>
    %106 = arith.subf %105, %97 : vector<8x32xf32>
    %107 = arith.mulf %106, %104 : vector<8x32xf32>
    %108 = arith.mulf %97, %84 : vector<8x32xf32>
    %109 = arith.addf %107, %108 : vector<8x32xf32>
    %110 = vector.extract_strided_slice %6 {offsets = [32, 0], sizes = [8, 96], strides = [1, 1]} : vector<64x96xf32> to vector<8x96xf32>
    %111 = arith.truncf %109 : vector<8x32xf32> to vector<8x32xbf16>
    %cst_22 = arith.constant dense<0.000000e+00> : vector<8x96xf32>
    %112 = tpu.matmul %111, %7, %cst_22 {dimension_numbers = #tpu.dot_dimension_numbers<[1], [0], [0], [1], [0, 0, 1, 1], [], []>} : vector<8x32xbf16>, vector<32x96xbf16>, vector<8x96xf32> -> vector<8x96xf32>
    %113 = vector.extract_strided_slice %110 {offsets = [0, 0], sizes = [8, 64], strides = [1, 1]} : vector<8x96xf32> to vector<8x64xf32>
    %114 = vector.extract_strided_slice %112 {offsets = [0, 0], sizes = [8, 64], strides = [1, 1]} : vector<8x96xf32> to vector<8x64xf32>
    %115 = arith.addf %113, %114 : vector<8x64xf32>
    %116 = arith.negf %115 : vector<8x64xf32>
    %117 = math.exp %116 : vector<8x64xf32>
    %cst_23 = arith.constant 1.000000e+00 : f32
    %118 = vector.broadcast %cst_23 : f32 to vector<8x64xf32>
    %119 = arith.addf %118, %117 : vector<8x64xf32>
    %120 = arith.divf %118, %119 : vector<8x64xf32>
    %121 = vector.extract_strided_slice %120 {offsets = [0, 0], sizes = [8, 32], strides = [1, 1]} : vector<8x64xf32> to vector<8x32xf32>
    %122 = vector.extract_strided_slice %120 {offsets = [0, 32], sizes = [8, 32], strides = [1, 1]} : vector<8x64xf32> to vector<8x32xf32>
    %123 = vector.extract_strided_slice %110 {offsets = [0, 64], sizes = [8, 32], strides = [1, 1]} : vector<8x96xf32> to vector<8x32xf32>
    %124 = vector.extract_strided_slice %112 {offsets = [0, 64], sizes = [8, 32], strides = [1, 1]} : vector<8x96xf32> to vector<8x32xf32>
    %125 = vector.broadcast %8 : vector<1x32xf32> to vector<8x32xf32>
    %126 = arith.addf %124, %125 : vector<8x32xf32>
    %127 = arith.mulf %121, %126 : vector<8x32xf32>
    %128 = arith.addf %123, %127 : vector<8x32xf32>
    %129 = math.tanh %128 : vector<8x32xf32>
    %cst_24 = arith.constant 1.000000e+00 : f32
    %130 = vector.broadcast %cst_24 : f32 to vector<8x32xf32>
    %131 = arith.subf %130, %122 : vector<8x32xf32>
    %132 = arith.mulf %131, %129 : vector<8x32xf32>
    %133 = arith.mulf %122, %109 : vector<8x32xf32>
    %134 = arith.addf %132, %133 : vector<8x32xf32>
    %135 = vector.extract_strided_slice %6 {offsets = [40, 0], sizes = [8, 96], strides = [1, 1]} : vector<64x96xf32> to vector<8x96xf32>
    %136 = arith.truncf %134 : vector<8x32xf32> to vector<8x32xbf16>
    %cst_25 = arith.constant dense<0.000000e+00> : vector<8x96xf32>
    %137 = tpu.matmul %136, %7, %cst_25 {dimension_numbers = #tpu.dot_dimension_numbers<[1], [0], [0], [1], [0, 0, 1, 1], [], []>} : vector<8x32xbf16>, vector<32x96xbf16>, vector<8x96xf32> -> vector<8x96xf32>
    %138 = vector.extract_strided_slice %135 {offsets = [0, 0], sizes = [8, 64], strides = [1, 1]} : vector<8x96xf32> to vector<8x64xf32>
    %139 = vector.extract_strided_slice %137 {offsets = [0, 0], sizes = [8, 64], strides = [1, 1]} : vector<8x96xf32> to vector<8x64xf32>
    %140 = arith.addf %138, %139 : vector<8x64xf32>
    %141 = arith.negf %140 : vector<8x64xf32>
    %142 = math.exp %141 : vector<8x64xf32>
    %cst_26 = arith.constant 1.000000e+00 : f32
    %143 = vector.broadcast %cst_26 : f32 to vector<8x64xf32>
    %144 = arith.addf %143, %142 : vector<8x64xf32>
    %145 = arith.divf %143, %144 : vector<8x64xf32>
    %146 = vector.extract_strided_slice %145 {offsets = [0, 0], sizes = [8, 32], strides = [1, 1]} : vector<8x64xf32> to vector<8x32xf32>
    %147 = vector.extract_strided_slice %145 {offsets = [0, 32], sizes = [8, 32], strides = [1, 1]} : vector<8x64xf32> to vector<8x32xf32>
    %148 = vector.extract_strided_slice %135 {offsets = [0, 64], sizes = [8, 32], strides = [1, 1]} : vector<8x96xf32> to vector<8x32xf32>
    %149 = vector.extract_strided_slice %137 {offsets = [0, 64], sizes = [8, 32], strides = [1, 1]} : vector<8x96xf32> to vector<8x32xf32>
    %150 = vector.broadcast %8 : vector<1x32xf32> to vector<8x32xf32>
    %151 = arith.addf %149, %150 : vector<8x32xf32>
    %152 = arith.mulf %146, %151 : vector<8x32xf32>
    %153 = arith.addf %148, %152 : vector<8x32xf32>
    %154 = math.tanh %153 : vector<8x32xf32>
    %cst_27 = arith.constant 1.000000e+00 : f32
    %155 = vector.broadcast %cst_27 : f32 to vector<8x32xf32>
    %156 = arith.subf %155, %147 : vector<8x32xf32>
    %157 = arith.mulf %156, %154 : vector<8x32xf32>
    %158 = arith.mulf %147, %134 : vector<8x32xf32>
    %159 = arith.addf %157, %158 : vector<8x32xf32>
    %160 = vector.extract_strided_slice %6 {offsets = [48, 0], sizes = [8, 96], strides = [1, 1]} : vector<64x96xf32> to vector<8x96xf32>
    %161 = arith.truncf %159 : vector<8x32xf32> to vector<8x32xbf16>
    %cst_28 = arith.constant dense<0.000000e+00> : vector<8x96xf32>
    %162 = tpu.matmul %161, %7, %cst_28 {dimension_numbers = #tpu.dot_dimension_numbers<[1], [0], [0], [1], [0, 0, 1, 1], [], []>} : vector<8x32xbf16>, vector<32x96xbf16>, vector<8x96xf32> -> vector<8x96xf32>
    %163 = vector.extract_strided_slice %160 {offsets = [0, 0], sizes = [8, 64], strides = [1, 1]} : vector<8x96xf32> to vector<8x64xf32>
    %164 = vector.extract_strided_slice %162 {offsets = [0, 0], sizes = [8, 64], strides = [1, 1]} : vector<8x96xf32> to vector<8x64xf32>
    %165 = arith.addf %163, %164 : vector<8x64xf32>
    %166 = arith.negf %165 : vector<8x64xf32>
    %167 = math.exp %166 : vector<8x64xf32>
    %cst_29 = arith.constant 1.000000e+00 : f32
    %168 = vector.broadcast %cst_29 : f32 to vector<8x64xf32>
    %169 = arith.addf %168, %167 : vector<8x64xf32>
    %170 = arith.divf %168, %169 : vector<8x64xf32>
    %171 = vector.extract_strided_slice %170 {offsets = [0, 0], sizes = [8, 32], strides = [1, 1]} : vector<8x64xf32> to vector<8x32xf32>
    %172 = vector.extract_strided_slice %170 {offsets = [0, 32], sizes = [8, 32], strides = [1, 1]} : vector<8x64xf32> to vector<8x32xf32>
    %173 = vector.extract_strided_slice %160 {offsets = [0, 64], sizes = [8, 32], strides = [1, 1]} : vector<8x96xf32> to vector<8x32xf32>
    %174 = vector.extract_strided_slice %162 {offsets = [0, 64], sizes = [8, 32], strides = [1, 1]} : vector<8x96xf32> to vector<8x32xf32>
    %175 = vector.broadcast %8 : vector<1x32xf32> to vector<8x32xf32>
    %176 = arith.addf %174, %175 : vector<8x32xf32>
    %177 = arith.mulf %171, %176 : vector<8x32xf32>
    %178 = arith.addf %173, %177 : vector<8x32xf32>
    %179 = math.tanh %178 : vector<8x32xf32>
    %cst_30 = arith.constant 1.000000e+00 : f32
    %180 = vector.broadcast %cst_30 : f32 to vector<8x32xf32>
    %181 = arith.subf %180, %172 : vector<8x32xf32>
    %182 = arith.mulf %181, %179 : vector<8x32xf32>
    %183 = arith.mulf %172, %159 : vector<8x32xf32>
    %184 = arith.addf %182, %183 : vector<8x32xf32>
    %185 = vector.extract_strided_slice %6 {offsets = [56, 0], sizes = [8, 96], strides = [1, 1]} : vector<64x96xf32> to vector<8x96xf32>
    %186 = arith.truncf %184 : vector<8x32xf32> to vector<8x32xbf16>
    %cst_31 = arith.constant dense<0.000000e+00> : vector<8x96xf32>
    %187 = tpu.matmul %186, %7, %cst_31 {dimension_numbers = #tpu.dot_dimension_numbers<[1], [0], [0], [1], [0, 0, 1, 1], [], []>} : vector<8x32xbf16>, vector<32x96xbf16>, vector<8x96xf32> -> vector<8x96xf32>
    %188 = vector.extract_strided_slice %185 {offsets = [0, 0], sizes = [8, 64], strides = [1, 1]} : vector<8x96xf32> to vector<8x64xf32>
    %189 = vector.extract_strided_slice %187 {offsets = [0, 0], sizes = [8, 64], strides = [1, 1]} : vector<8x96xf32> to vector<8x64xf32>
    %190 = arith.addf %188, %189 : vector<8x64xf32>
    %191 = arith.negf %190 : vector<8x64xf32>
    %192 = math.exp %191 : vector<8x64xf32>
    %cst_32 = arith.constant 1.000000e+00 : f32
    %193 = vector.broadcast %cst_32 : f32 to vector<8x64xf32>
    %194 = arith.addf %193, %192 : vector<8x64xf32>
    %195 = arith.divf %193, %194 : vector<8x64xf32>
    %196 = vector.extract_strided_slice %195 {offsets = [0, 0], sizes = [8, 32], strides = [1, 1]} : vector<8x64xf32> to vector<8x32xf32>
    %197 = vector.extract_strided_slice %195 {offsets = [0, 32], sizes = [8, 32], strides = [1, 1]} : vector<8x64xf32> to vector<8x32xf32>
    %198 = vector.extract_strided_slice %185 {offsets = [0, 64], sizes = [8, 32], strides = [1, 1]} : vector<8x96xf32> to vector<8x32xf32>
    %199 = vector.extract_strided_slice %187 {offsets = [0, 64], sizes = [8, 32], strides = [1, 1]} : vector<8x96xf32> to vector<8x32xf32>
    %200 = vector.broadcast %8 : vector<1x32xf32> to vector<8x32xf32>
    %201 = arith.addf %199, %200 : vector<8x32xf32>
    %202 = arith.mulf %196, %201 : vector<8x32xf32>
    %203 = arith.addf %198, %202 : vector<8x32xf32>
    %204 = math.tanh %203 : vector<8x32xf32>
    %cst_33 = arith.constant 1.000000e+00 : f32
    %205 = vector.broadcast %cst_33 : f32 to vector<8x32xf32>
    %206 = arith.subf %205, %197 : vector<8x32xf32>
    %207 = arith.mulf %206, %204 : vector<8x32xf32>
    %208 = arith.mulf %197, %184 : vector<8x32xf32>
    %209 = arith.addf %207, %208 : vector<8x32xf32>
    %210 = tpu.concatenate %34, %59, %84, %109, %134, %159, %184, %209 in 0 : vector<8x32xf32>, vector<8x32xf32>, vector<8x32xf32>, vector<8x32xf32>, vector<8x32xf32>, vector<8x32xf32>, vector<8x32xf32>, vector<8x32xf32> -> vector<64x32xf32>
    %211 = arith.truncf %210 : vector<64x32xf32> to vector<64x32xbf16>
    %c0_34 = arith.constant 0 : index
    %c0_35 = arith.constant 0 : index
    %212 = vector.load %arg6[%c0_34, %c0_35] : memref<32x16xbf16, #tpu.memory_space<vmem>>, vector<32x16xbf16>
    %cst_36 = arith.constant dense<0.000000e+00> : vector<64x16xf32>
    %213 = tpu.matmul %211, %212, %cst_36 {dimension_numbers = #tpu.dot_dimension_numbers<[1], [0], [0], [1], [0, 0, 1, 1], [], []>} : vector<64x32xbf16>, vector<32x16xbf16>, vector<64x16xf32> -> vector<64x16xf32>
    %c0_37 = arith.constant 0 : index
    %c0_38 = arith.constant 0 : index
    %214 = vector.load %arg7[%c0_37, %c0_38] : memref<1x16xf32, #tpu.memory_space<vmem>>, vector<1x16xf32>
    %215 = vector.broadcast %214 : vector<1x16xf32> to vector<64x16xf32>
    %216 = arith.addf %213, %215 : vector<64x16xf32>
    %c0_39 = arith.constant 0 : index
    %c0_40 = arith.constant 0 : index
    %217 = vector.load %arg8[%c0_39, %c0_40] : memref<64x16xf32, #tpu.memory_space<vmem>>, vector<64x16xf32>
    tpu.vector_store %arg8[%c0_39, %c0_40], %216 {strides = array<i32>} : memref<64x16xf32, #tpu.memory_space<vmem>>, vector<64x16xf32>,
    return
  }
  func.func @transform_0(%arg0: i32) -> (i32, i32) {
    %c0_i32 = arith.constant 0 : i32
    %c0_i32_0 = arith.constant 0 : i32
    %c0_i32_1 = arith.constant 0 : i32
    return %c0_i32, %c0_i32_0 : i32, i32
  }
  func.func @transform_1(%arg0: i32) -> (i32, i32) {
    %c0_i32 = arith.constant 0 : i32
    %c0_i32_0 = arith.constant 0 : i32
    %c0_i32_1 = arith.constant 0 : i32
    return %c0_i32, %c0_i32_0 : i32, i32
  }
  func.func @transform_2(%arg0: i32) -> (i32, i32) {
    %c0_i32 = arith.constant 0 : i32
    %c0_i32_0 = arith.constant 0 : i32
    %c0_i32_1 = arith.constant 0 : i32
    return %c0_i32, %c0_i32_0 : i32, i32
  }
  func.func @transform_3(%arg0: i32) -> (i32, i32) {
    %c0_i32 = arith.constant 0 : i32
    %c0_i32_0 = arith.constant 0 : i32
    %c0_i32_1 = arith.constant 0 : i32
    return %c0_i32, %c0_i32_0 : i32, i32
  }
  func.func @transform_4(%arg0: i32) -> (i32, i32) {
    %c0_i32 = arith.constant 0 : i32
    %c0_i32_0 = arith.constant 0 : i32
    %c0_i32_1 = arith.constant 0 : i32
    return %c0_i32, %c0_i32_0 : i32, i32
  }
  func.func @transform_5(%arg0: i32) -> (i32, i32) {
    %c0_i32 = arith.constant 0 : i32
    %c0_i32_0 = arith.constant 0 : i32
    %c0_i32_1 = arith.constant 0 : i32
    return %c0_i32, %c0_i32_0 : i32, i32
  }
  func.func @transform_6(%arg0: i32) -> (i32, i32) {
    %c0_i32 = arith.constant 0 : i32
    %c0_i32_0 = arith.constant 0 : i32
    %c0_i32_1 = arith.constant 0 : i32
    return %c0_i32, %c0_i32_0 : i32, i32
  }
  func.func @transform_7(%arg0: i32) -> (i32, i32) {
    %c0_i32 = arith.constant 0 : i32
    %c0_i32_0 = arith.constant 0 : i32
    %c0_i32_1 = arith.constant 0 : i32
    return %c0_i32, %c0_i32_0 : i32, i32
  }
}

</mosaic_0001>

<bundles_post_ra>
// kernel: tpu_custom_call.1
= control target key start
LH: loop header
LB: loop body
LE: loop exit
PB: predicated region body
PF: predicated region fallthrough
CT: control target
= control target key end

     0   :  { %vm51_vm0 = vcmask 130048   ;;  %s783_s12 = smov 64   ;;  %v784_v7 = vmov 0   ;;  %vm110_vm5 = vcmask 261120   ;;  %s1043_s2 = inlined_call_operand.vmem [shape: bf16[32,96], index: 2, kind: input, shape index: {}]   ;;  %s1044_s1 = inlined_call_operand.vmem [shape: bf16[16,96], index: 1, kind: input, shape index: {}]   ;;  %s1045_s0 = inlined_call_operand.vmem [shape: f32[64,16], index: 0, kind: input, shape index: {}]   ;;  %s1046_s4 = inlined_call_operand.vmem [shape: f32[1,32], index: 4, kind: input, shape index: {}]   ;;  %s1047_s3 = inlined_call_operand.vmem [shape: f32[1,96], index: 3, kind: input, shape index: {}]   ;;  %s1048_s5 = inlined_call_operand.vmem [shape: bf16[32,16], index: 5, kind: input, shape index: {}]   ;;  %s1049_s6 = inlined_call_operand.vmem [shape: f32[1,16], index: 6, kind: input, shape index: {}]   ;;  %s1050_s7 = inlined_call_operand.vmem [shape: f32[64,16], index: 7, kind: output, shape index: {}]  }
   0x1   :  { %v829_v0 = vld [vmem:[%s1043_s2 + $0x8] sm:$0xff]  ;;  %v724_v1 = vld [vmem:[%s1044_s1] sm:$0xff] }
   0x2   :  { %v27_v2 = vld [vmem:[%s1045_s0] sm:$0xff]  ;;  %v28_v3 = vld [vmem:[%s1045_s0 + $0x8] sm:$0xff]  ;;  %120 = vmatpush.bf16.msra.mxu1 %v829_v0  ;;  %71 = vmatpush.bf16.msra.mxu0 %v724_v1 }
   0x3   :  { %v844_v4 = vld [vmem:[%s1043_s2] sm:$0xff]  ;;  %v35_v5 = vpack.c.bf16 %v28_v3, %v27_v2  ;;  %185 = vmatpush.bf16.msra.mxu2 %v829_v0  ;;  %v29_v2 = vld [vmem:[%s1045_s0 + $0x10] sm:$0xff]  ;;  %v30_v3 = vld [vmem:[%s1045_s0 + $0x18] sm:$0xff] }
   0x4   :  { %v732_v6 = vld [vmem:[%s1046_s4] ss:$0 sm:$0xff] }
   0x5   :  { %149 = vrot.lane.b32.xlu0 %v732_v6, %s783_s12  ;;  %685 = vmatmul.msk.bf16.vlgmr.msra.gmra.mxu0 %vm51_vm0, %v35_v5  ;;  %v867_v12 = vld [vmem:[%s1047_s3] ss:$0 sm:$0xff]  ;;  %s785_s3 = smov 96   ;;  %v36_v5 = vpack.c.bf16 %v30_v3, %v29_v2 }
   0x6   :  { %121 = vmatpush.bf16.msra.mxu1 %v844_v4 }
   0x7   :  { %186 = vmatpush.bf16.msra.mxu2 %v844_v4 }
   0x9   :  { %122 = vmatmul.bf16.vlgmr.msra.gmra.mxu1 %v784_v7 }
   0xa   :  { %245 = vmatpush.bf16.msrb.mxu1 %v829_v0 }
   0xb   :  { %365 = vmatpush.bf16.msrb.mxu2 %v829_v0 }
   0xe   :  { %246 = vmatpush.bf16.msrb.mxu1 %v844_v4 }
   0xf   :  { %366 = vmatpush.bf16.msrb.mxu2 %v844_v4 }
  0x12   :  { %305 = vmatpush.bf16.msra.mxu1 %v829_v0 }
  0x15   :  { %686 = vmatmul.msk.bf16.gmra.mxu0 %vm51_vm0, %v36_v5 }
  0x16   :  { %306 = vmatpush.bf16.msra.mxu1 %v844_v4 }
  0x77   :  { %v860_v8 = vpop.permute.xlu0 %149 }
  0x82   :  { %v73_v13 = vpop.f32.mrf.mxu0 }
  0x83   :  { %v74_v14 = vadd.f32 %v867_v12, %v73_v13 }
  0x86   :  { %v123_v9 = vpop.f32.mrf.mxu1 }
  0x87   :  { %v152_v10 = vadd.f32 %v860_v8, %v123_v9  ;;  %v127_v15 = vadd.f32 %v123_v9, %v74_v14 }
  0x89   :  { %154 = vrot.lane.b32.xlu0 %v152_v10, %s783_s12  ;;  %v697_v16 = vmul.f32 -1.442695, %v127_v15 }
  0x8a   :  { %v75_v44 = vpop.f32.mrf.mxu0 }
  0x8b   :  { %735 = vpow2.f32 %v697_v16  ;;  %v76_v45 = vadd.f32 %v867_v12, %v75_v44 }
  0x8e   :  { %v125_v11 = vpop.f32.mrf.mxu1 }
  0x91   :  { %v736_v17 = vpop.eup %735 }
  0x92   :  { %v131_v18 = vadd.f32 1.0, %v736_v17 }
  0x94   :  { %737 = vrcp.f32 %v131_v18  ;;  %v143_v24 = vand.u32 2147483648, %v131_v18  ;;  %vm137_vm2 = vweird.f32 %v131_v18  ;;  %v141_v25 = vand.u32 2147483647, %v131_v18 }
  0x96   :  { %v144_v27 = vor.u32 1.1754944e-38, %v143_v24  ;;  %vm142_vm4 = vcmp.eq.f32.partialorder %v141_v25, 8.507059e+37 }
  0x9a   :  { %v738_v19 = vpop.eup %737 }
  0x9b   :  { %v133_v20 = vmul.f32 %v738_v19, %v131_v18  ;;  %vm138_vm1 = vweird.f32 %v738_v19  ;;  %v78_v18 = vpop.f32.mrf.mxu0 }
  0x9c   :  { %vm139_vm3 = vmor %vm137_vm2, %vm138_vm1 }
  0x9d   :  { %v134_v21 = vsub.f32 1.0, %v133_v20 }
  0x9f   :  { %v135_v22 = vmul.f32 %v738_v19, %v134_v21 }
  0xa1   :  { %v136_v23 = vadd.f32 %v738_v19, %v135_v22 }
  0xa3   :  { %v140_v26 = vsel %vm139_vm3, %v738_v19, %v136_v23  ;;  %v79_v19 = vadd.f32 %v867_v12, %v78_v18  ;;  %v31_v18 = vld [vmem:[%s1045_s0 + $0x20] sm:$0xff] }
  0xa4   :  { %v145_v29 = vsel %vm142_vm4, %v144_v27, %v140_v26 }
  0xa5   :  { %v164_v34 = vsub.f32 1.0, %v145_v29  ;;  %v170_v36 = vmul.f32 0.0, %v145_v29 }
  0xfb   :  { %v155_v28 = vpop.permute.xlu0 %154 }
  0xfc   :  { %v157_v30 = vmul.f32 %v155_v28, %v145_v29 }
  0xfe   :  { %159 = vrot.lane.b32.xlu1 %v157_v30, %s783_s12 }
 0x170   :  { %v160_v31 = vpop.permute.xlu1 %159 }
 0x171   :  { %v162_v32 = vadd.f32 %v160_v31, %v74_v14 }
 0x173   :  { %739 = vtanh.f32 %v162_v32 }
 0x179   :  { %v740_v33 = vpop.eup %739 }
 0x17a   :  { %166 = vrot.lane.b32.xlu1 %v740_v33, %s785_s3 }
 0x1ec   :  { %v167_v35 = vpop.permute.xlu1 %166 }
 0x1ed   :  { %v169_v37 = vmul.f32 %v167_v35, %v164_v34 }
 0x1ef   :  { %v872_v38 = vadd.f32 %v170_v36, %v169_v37 }
 0x1f1   :  { %v172_v39 = vpack.c.bf16 %v872_v38, %v872_v38 }
 0x1f3   :  { %174 = vrot.lane.b32.xlu2 %v172_v39, %s785_s3 }
 0x24d   :  { %v175_v40 = vpop.permute.xlu2 %174 }
 0x24e   :  { %698 = vmatmul.msk.bf16.vlgmr.msra.gmra.mxu2 %vm110_vm5, %v175_v40 }
 0x24f   :  { %425 = vmatpush.bf16.msra.mxu2 %v829_v0 }
 0x253   :  { %426 = vmatpush.bf16.msra.mxu2 %v844_v4 }
 0x2d1   :  { %v188_v41 = vpop.f32.mrf.mxu2 }
 0x2d2   :  { %v212_v42 = vadd.f32 %v188_v41, %v860_v8  ;;  %v192_v46 = vadd.f32 %v188_v41, %v76_v45 }
 0x2d4   :  { %214 = vrot.lane.b32.xlu2 %v212_v42, %s783_s12  ;;  %v699_v47 = vmul.f32 -1.442695, %v192_v46 }
 0x2d6   :  { %741 = vpow2.f32 %v699_v47 }
 0x2d9   :  { %v190_v43 = vpop.f32.mrf.mxu2 }
 0x2dc   :  { %v742_v48 = vpop.eup %741 }
 0x2dd   :  { %v196_v49 = vadd.f32 1.0, %v742_v48 }
 0x2df   :  { %743 = vrcp.f32 %v196_v49  ;;  %v208_v55 = vand.u32 2147483648, %v196_v49  ;;  %vm202_vm7 = vweird.f32 %v196_v49  ;;  %v206_v56 = vand.u32 2147483647, %v196_v49 }
 0x2e1   :  { %v209_v58 = vor.u32 1.1754944e-38, %v208_v55  ;;  %vm207_vm9 = vcmp.eq.f32.partialorder %v206_v56, 8.507059e+37 }
 0x2e5   :  { %v744_v50 = vpop.eup %743 }
 0x2e6   :  { %v198_v51 = vmul.f32 %v744_v50, %v196_v49  ;;  %vm203_vm6 = vweird.f32 %v744_v50 }
 0x2e7   :  { %vm204_vm8 = vmor %vm202_vm7, %vm203_vm6 }
 0x2e8   :  { %v199_v52 = vsub.f32 1.0, %v198_v51 }
 0x2ea   :  { %v200_v53 = vmul.f32 %v744_v50, %v199_v52 }
 0x2ec   :  { %v201_v54 = vadd.f32 %v744_v50, %v200_v53 }
 0x2ee   :  { %v205_v57 = vsel %vm204_vm8, %v744_v50, %v201_v54  ;;  %v80_v50 = vpop.f32.mrf.mxu0 }
 0x2ef   :  { %v210_v60 = vsel %vm207_vm9, %v209_v58, %v205_v57  ;;  %v81_v51 = vadd.f32 %v867_v12, %v80_v50 }
 0x2f0   :  { %v224_v6 = vsub.f32 1.0, %v210_v60  ;;  %v230_v9 = vmul.f32 %v210_v60, %v872_v38 }
 0x32e   :  { %v215_v59 = vpop.permute.xlu2 %214 }
 0x32f   :  { %v217_v61 = vmul.f32 %v215_v59, %v210_v60 }
 0x331   :  { %219 = vrot.lane.b32.xlu0 %v217_v61, %s783_s12 }
 0x3a3   :  { %v220_v62 = vpop.permute.xlu0 %219 }
 0x3a4   :  { %v222_v63 = vadd.f32 %v220_v62, %v76_v45 }
 0x3a6   :  { %745 = vtanh.f32 %v222_v63 }
 0x3ac   :  { %v746_v1 = vpop.eup %745 }
 0x3ad   :  { %226 = vrot.lane.b32.xlu1 %v746_v1, %s785_s3 }
 0x41f   :  { %v227_v7 = vpop.permute.xlu1 %226 }
 0x420   :  { %v229_v10 = vmul.f32 %v227_v7, %v224_v6 }
 0x422   :  { %v893_v11 = vadd.f32 %v230_v9, %v229_v10 }
 0x424   :  { %v232_v13 = vpack.c.bf16 %v893_v11, %v893_v11 }
 0x426   :  { %234 = vrot.lane.b32.xlu2 %v232_v13, %s785_s3 }
 0x480   :  { %v235_v14 = vpop.permute.xlu2 %234 }
 0x481   :  { %700 = vmatmul.msk.bf16.vlgmr.msrb.gmra.mxu1 %vm110_vm5, %v235_v14 }
 0x482   :  { %485 = vmatpush.bf16.msrb.mxu1 %v829_v0 }
 0x486   :  { %486 = vmatpush.bf16.msrb.mxu1 %v844_v4 }
 0x4fe   :  { %v248_v15 = vpop.f32.mrf.mxu1 }
 0x4ff   :  { %v272_v16 = vadd.f32 %v248_v15, %v860_v8  ;;  %v252_v20 = vadd.f32 %v248_v15, %v79_v19 }
 0x501   :  { %274 = vrot.lane.b32.xlu0 %v272_v16, %s783_s12  ;;  %v701_v21 = vmul.f32 -1.442695, %v252_v20 }
 0x503   :  { %747 = vpow2.f32 %v701_v21 }
 0x506   :  { %v250_v17 = vpop.f32.mrf.mxu1 }
 0x509   :  { %v748_v22 = vpop.eup %747 }
 0x50a   :  { %v256_v23 = vadd.f32 1.0, %v748_v22 }
 0x50c   :  { %749 = vrcp.f32 %v256_v23  ;;  %v268_v29 = vand.u32 2147483648, %v256_v23  ;;  %vm262_vm11 = vweird.f32 %v256_v23  ;;  %v266_v30 = vand.u32 2147483647, %v256_v23 }
 0x50e   :  { %v269_v32 = vor.u32 1.1754944e-38, %v268_v29  ;;  %vm267_vm13 = vcmp.eq.f32.partialorder %v266_v30, 8.507059e+37 }
 0x512   :  { %v750_v24 = vpop.eup %749 }
 0x513   :  { %v258_v25 = vmul.f32 %v750_v24, %v256_v23  ;;  %vm263_vm10 = vweird.f32 %v750_v24 }
 0x514   :  { %vm264_vm12 = vmor %vm262_vm11, %vm263_vm10 }
 0x515   :  { %v259_v26 = vsub.f32 1.0, %v258_v25 }
 0x517   :  { %v260_v27 = vmul.f32 %v750_v24, %v259_v26 }
 0x519   :  { %v261_v28 = vadd.f32 %v750_v24, %v260_v27 }
 0x51b   :  { %v265_v31 = vsel %vm264_vm12, %v750_v24, %v261_v28 }
 0x51c   :  { %v270_v34 = vsel %vm267_vm13, %v269_v32, %v265_v31 }
 0x51d   :  { %v284_v40 = vsub.f32 1.0, %v270_v34  ;;  %v290_v42 = vmul.f32 %v270_v34, %v893_v11 }
 0x573   :  { %v275_v33 = vpop.permute.xlu0 %274 }
 0x574   :  { %v277_v35 = vmul.f32 %v275_v33, %v270_v34 }
 0x576   :  { %279 = vrot.lane.b32.xlu1 %v277_v35, %s783_s12 }
 0x5e8   :  { %v280_v36 = vpop.permute.xlu1 %279 }
 0x5e9   :  { %v282_v37 = vadd.f32 %v280_v36, %v79_v19  ;;  %v32_v19 = vld [vmem:[%s1045_s0 + $0x28] sm:$0xff] }
 0x5ea   :  { %v37_v20 = vpack.c.bf16 %v32_v19, %v31_v18  ;;  %v33_v19 = vld [vmem:[%s1045_s0 + $0x30] sm:$0xff] }
 0x5eb   :  { %751 = vtanh.f32 %v282_v37 }
 0x5ec   :  { %687 = vmatmul.msk.bf16.gmra.mxu0 %vm51_vm0, %v37_v20  ;;  %v34_v20 = vld [vmem:[%s1045_s0 + $0x38] sm:$0xff] }
 0x5f1   :  { %v752_v39 = vpop.eup %751 }
 0x5f2   :  { %286 = vrot.lane.b32.xlu2 %v752_v39, %s785_s3 }
 0x64c   :  { %v287_v41 = vpop.permute.xlu2 %286 }
 0x64d   :  { %v289_v43 = vmul.f32 %v287_v41, %v284_v40 }
 0x64f   :  { %v907_v44 = vadd.f32 %v290_v42, %v289_v43 }
 0x651   :  { %v292_v45 = vpack.c.bf16 %v907_v44, %v907_v44 }
 0x653   :  { %294 = vrot.lane.b32.xlu0 %v292_v45, %s785_s3 }
 0x669   :  { %v83_v25 = vpop.f32.mrf.mxu0 }
 0x66a   :  { %v84_v26 = vadd.f32 %v867_v12, %v83_v25 }
 0x6c5   :  { %v295_v46 = vpop.permute.xlu0 %294 }
 0x6c6   :  { %702 = vmatmul.msk.bf16.vlgmr.msra.gmra.mxu1 %vm110_vm5, %v295_v46 }
 0x743   :  { %v308_v47 = vpop.f32.mrf.mxu1 }
 0x744   :  { %v332_v48 = vadd.f32 %v308_v47, %v860_v8  ;;  %v312_v52 = vadd.f32 %v308_v47, %v81_v51 }
 0x746   :  { %334 = vrot.lane.b32.xlu1 %v332_v48, %s783_s12  ;;  %v703_v53 = vmul.f32 -1.442695, %v312_v52 }
 0x748   :  { %753 = vpow2.f32 %v703_v53 }
 0x74b   :  { %v310_v49 = vpop.f32.mrf.mxu1 }
 0x74e   :  { %v754_v54 = vpop.eup %753 }
 0x74f   :  { %v316_v55 = vadd.f32 1.0, %v754_v54 }
 0x751   :  { %755 = vrcp.f32 %v316_v55  ;;  %v328_v61 = vand.u32 2147483648, %v316_v55  ;;  %vm322_vm15 = vweird.f32 %v316_v55  ;;  %v326_v62 = vand.u32 2147483647, %v316_v55 }
 0x753   :  { %v329_v1 = vor.u32 1.1754944e-38, %v328_v61  ;;  %vm327_vm2 = vcmp.eq.f32.partialorder %v326_v62, 8.507059e+37 }
 0x757   :  { %v756_v56 = vpop.eup %755 }
 0x758   :  { %v318_v57 = vmul.f32 %v756_v56, %v316_v55  ;;  %vm323_vm14 = vweird.f32 %v756_v56 }
 0x759   :  { %vm324_vm1 = vmor %vm322_vm15, %vm323_vm14 }
 0x75a   :  { %v319_v58 = vsub.f32 1.0, %v318_v57 }
 0x75c   :  { %v320_v59 = vmul.f32 %v756_v56, %v319_v58 }
 0x75e   :  { %v321_v60 = vadd.f32 %v756_v56, %v320_v59 }
 0x760   :  { %v325_v63 = vsel %vm324_vm1, %v756_v56, %v321_v60  ;;  %v85_v56 = vpop.f32.mrf.mxu0 }
 0x761   :  { %v330_v3 = vsel %vm327_vm2, %v329_v1, %v325_v63  ;;  %v86_v57 = vadd.f32 %v867_v12, %v85_v56 }
 0x762   :  { %v344_v10 = vsub.f32 1.0, %v330_v3  ;;  %v350_v14 = vmul.f32 %v330_v3, %v907_v44 }
 0x7b8   :  { %v335_v2 = vpop.permute.xlu1 %334 }
 0x7b9   :  { %v337_v5 = vmul.f32 %v335_v2, %v330_v3 }
 0x7bb   :  { %339 = vrot.lane.b32.xlu2 %v337_v5, %s783_s12 }
 0x815   :  { %v340_v6 = vpop.permute.xlu2 %339 }
 0x816   :  { %v342_v7 = vadd.f32 %v340_v6, %v81_v51 }
 0x818   :  { %757 = vtanh.f32 %v342_v7 }
 0x81e   :  { %v758_v9 = vpop.eup %757 }
 0x81f   :  { %346 = vrot.lane.b32.xlu0 %v758_v9, %s785_s3 }
 0x891   :  { %v347_v13 = vpop.permute.xlu0 %346 }
 0x892   :  { %v349_v15 = vmul.f32 %v347_v13, %v344_v10 }
 0x894   :  { %v919_v16 = vadd.f32 %v350_v14, %v349_v15 }
 0x896   :  { %v352_v17 = vpack.c.bf16 %v919_v16, %v919_v16 }
 0x898   :  { %354 = vrot.lane.b32.xlu1 %v352_v17, %s785_s3 }
 0x90a   :  { %v355_v21 = vpop.permute.xlu1 %354 }
 0x90b   :  { %704 = vmatmul.msk.bf16.vlgmr.msrb.gmra.mxu2 %vm110_vm5, %v355_v21  ;;  %v38_v21 = vpack.c.bf16 %v34_v20, %v33_v19 }
 0x90c   :  { %545 = vmatpush.bf16.msrb.mxu2 %v829_v0 }
 0x90d   :  { %688 = vmatmul.msk.bf16.gmra.mxu0 %vm51_vm0, %v38_v21 }
 0x910   :  { %546 = vmatpush.bf16.msrb.mxu2 %v844_v4 }
 0x98e   :  { %v368_v22 = vpop.f32.mrf.mxu2 }
 0x98f   :  { %v392_v23 = vadd.f32 %v368_v22, %v860_v8  ;;  %v372_v27 = vadd.f32 %v368_v22, %v84_v26 }
 0x991   :  { %394 = vrot.lane.b32.xlu2 %v392_v23, %s783_s12  ;;  %v705_v28 = vmul.f32 -1.442695, %v372_v27 }
 0x993   :  { %759 = vpow2.f32 %v705_v28 }
 0x996   :  { %v370_v24 = vpop.f32.mrf.mxu2 }
 0x999   :  { %v760_v29 = vpop.eup %759 }
 0x99a   :  { %v376_v30 = vadd.f32 1.0, %v760_v29 }
 0x99c   :  { %761 = vrcp.f32 %v376_v30  ;;  %v388_v34 = vand.u32 2147483648, %v376_v30  ;;  %vm382_vm4 = vweird.f32 %v376_v30  ;;  %v386_v35 = vand.u32 2147483647, %v376_v30 }
 0x99e   :  { %v389_v37 = vor.u32 1.1754944e-38, %v388_v34  ;;  %vm387_vm7 = vcmp.eq.f32.partialorder %v386_v35, 8.507059e+37 }
 0x9a2   :  { %v762_v31 = vpop.eup %761 }
 0x9a3   :  { %v378_v32 = vmul.f32 %v762_v31, %v376_v30  ;;  %vm383_vm3 = vweird.f32 %v762_v31 }
 0x9a4   :  { %vm384_vm6 = vmor %vm382_vm4, %vm383_vm3 }
 0x9a5   :  { %v379_v0 = vsub.f32 1.0, %v378_v32  ;;  %v88_v32 = vpop.f32.mrf.mxu0 }
 0x9a7   :  { %v380_v33 = vmul.f32 %v762_v31, %v379_v0  ;;  %v89_v0 = vadd.f32 %v867_v12, %v88_v32 }
 0x9a9   :  { %v381_v4 = vadd.f32 %v762_v31, %v380_v33 }
 0x9ab   :  { %v385_v36 = vsel %vm384_vm6, %v762_v31, %v381_v4 }
 0x9ac   :  { %v390_v40 = vsel %vm387_vm7, %v389_v37, %v385_v36 }
 0x9ad   :  { %v404_v46 = vsub.f32 1.0, %v390_v40  ;;  %v410_v48 = vmul.f32 %v390_v40, %v919_v16 }
 0x9eb   :  { %v395_v39 = vpop.permute.xlu2 %394 }
 0x9ec   :  { %v397_v41 = vmul.f32 %v395_v39, %v390_v40 }
 0x9ee   :  { %399 = vrot.lane.b32.xlu0 %v397_v41, %s783_s12 }
 0xa60   :  { %v400_v42 = vpop.permute.xlu0 %399 }
 0xa61   :  { %v402_v43 = vadd.f32 %v400_v42, %v84_v26 }
 0xa63   :  { %763 = vtanh.f32 %v402_v43 }
 0xa69   :  { %v764_v45 = vpop.eup %763 }
 0xa6a   :  { %406 = vrot.lane.b32.xlu1 %v764_v45, %s785_s3 }
 0xadc   :  { %v407_v47 = vpop.permute.xlu1 %406 }
 0xadd   :  { %v409_v49 = vmul.f32 %v407_v47, %v404_v46 }
 0xadf   :  { %v940_v50 = vadd.f32 %v410_v48, %v409_v49 }
 0xae1   :  { %v412_v51 = vpack.c.bf16 %v940_v50, %v940_v50 }
 0xae3   :  { %414 = vrot.lane.b32.xlu2 %v412_v51, %s785_s3 }
 0xb3d   :  { %v415_v52 = vpop.permute.xlu2 %414 }
 0xb3e   :  { %706 = vmatmul.msk.bf16.vlgmr.msra.gmra.mxu2 %vm110_vm5, %v415_v52 }
 0xbc1   :  { %v428_v53 = vpop.f32.mrf.mxu2 }
 0xbc2   :  { %v452_v54 = vadd.f32 %v428_v53, %v860_v8  ;;  %v432_v58 = vadd.f32 %v428_v53, %v86_v57 }
 0xbc4   :  { %454 = vrot.lane.b32.xlu0 %v452_v54, %s783_s12  ;;  %v707_v59 = vmul.f32 -1.442695, %v432_v58 }
 0xbc6   :  { %765 = vpow2.f32 %v707_v59 }
 0xbc9   :  { %v430_v55 = vpop.f32.mrf.mxu2 }
 0xbcc   :  { %v766_v60 = vpop.eup %765 }
 0xbcd   :  { %v436_v61 = vadd.f32 1.0, %v766_v60  ;;  %v592_v60 = vpack.c.bf16 %v893_v11, %v872_v38 }
 0xbcf   :  { %767 = vrcp.f32 %v436_v61  ;;  %v448_v5 = vand.u32 2147483648, %v436_v61  ;;  %vm442_vm9 = vweird.f32 %v436_v61  ;;  %v446_v6 = vand.u32 2147483647, %v436_v61 }
 0xbd1   :  { %v449_v9 = vor.u32 1.1754944e-38, %v448_v5  ;;  %vm447_vm11 = vcmp.eq.f32.partialorder %v446_v6, 8.507059e+37 }
 0xbd5   :  { %v768_v62 = vpop.eup %767 }
 0xbd6   :  { %v438_v63 = vmul.f32 %v768_v62, %v436_v61  ;;  %vm443_vm8 = vweird.f32 %v768_v62 }
 0xbd7   :  { %vm444_vm10 = vmor %vm442_vm9, %vm443_vm8 }
 0xbd8   :  { %v439_v1 = vsub.f32 1.0, %v438_v63  ;;  %v727_v63 = vld [vmem:[%s1048_s5] sm:$0xff] }
 0xbda   :  { %v440_v2 = vmul.f32 %v768_v62, %v439_v1 }
 0xbdc   :  { %v441_v3 = vadd.f32 %v768_v62, %v440_v2  ;;  %v989_v2 = vld [vmem:[%s1049_s6] ss:$0 sm:$0xff] }
 0xbde   :  { %v445_v7 = vsel %vm444_vm10, %v768_v62, %v441_v3  ;;  %v728_v62 = vld [vmem:[%s1048_s5 + $0x8] sm:$0xff] }
 0xbdf   :  { %v450_v13 = vsel %vm447_vm11, %v449_v9, %v445_v7  ;;  %646 = vmatpush.bf16.msra.mxu3 %v728_v62 }
 0xbe0   :  { %v464_v22 = vsub.f32 1.0, %v450_v13  ;;  %v470_v24 = vmul.f32 %v450_v13, %v940_v50 }
 0xbe3   :  { %647 = vmatpush.bf16.msra.mxu3 %v727_v63 }
 0xc36   :  { %v455_v10 = vpop.permute.xlu0 %454 }
 0xc37   :  { %v457_v14 = vmul.f32 %v455_v10, %v450_v13 }
 0xc39   :  { %459 = vrot.lane.b32.xlu1 %v457_v14, %s783_s12 }
 0xcab   :  { %v460_v15 = vpop.permute.xlu1 %459 }
 0xcac   :  { %v462_v17 = vadd.f32 %v460_v15, %v86_v57 }
 0xcae   :  { %769 = vtanh.f32 %v462_v17 }
 0xcb4   :  { %v770_v18 = vpop.eup %769 }
 0xcb5   :  { %466 = vrot.lane.b32.xlu2 %v770_v18, %s785_s3 }
 0xd0f   :  { %v467_v23 = vpop.permute.xlu2 %466 }
 0xd10   :  { %v469_v25 = vmul.f32 %v467_v23, %v464_v22 }
 0xd12   :  { %v471_v26 = vadd.f32 %v470_v24, %v469_v25 }
 0xd14   :  { %v472_v27 = vpack.c.bf16 %v471_v26, %v471_v26  ;;  %v594_v61 = vpack.c.bf16 %v471_v26, %v940_v50 }
 0xd16   :  { %474 = vrot.lane.b32.xlu0 %v472_v27, %s785_s3 }
 0xd88   :  { %v475_v28 = vpop.permute.xlu0 %474 }
 0xd89   :  { %708 = vmatmul.msk.bf16.vlgmr.msrb.gmra.mxu1 %vm110_vm5, %v475_v28 }
 0xe06   :  { %v488_v29 = vpop.f32.mrf.mxu1 }
 0xe07   :  { %v512_v30 = vadd.f32 %v488_v29, %v860_v8  ;;  %v492_v33 = vadd.f32 %v488_v29, %v89_v0  ;;  %v593_v29 = vpack.c.bf16 %v919_v16, %v907_v44 }
 0xe09   :  { %514 = vrot.lane.b32.xlu1 %v512_v30, %s783_s12  ;;  %v709_v4 = vmul.f32 -1.442695, %v492_v33 }
 0xe0b   :  { %771 = vpow2.f32 %v709_v4 }
 0xe0e   :  { %v490_v31 = vpop.f32.mrf.mxu1 }
 0xe11   :  { %v772_v34 = vpop.eup %771 }
 0xe12   :  { %v496_v35 = vadd.f32 1.0, %v772_v34 }
 0xe14   :  { %773 = vrcp.f32 %v496_v35  ;;  %v508_v42 = vand.u32 2147483648, %v496_v35  ;;  %vm502_vm13 = vweird.f32 %v496_v35  ;;  %v506_v43 = vand.u32 2147483647, %v496_v35 }
 0xe16   :  { %v509_v46 = vor.u32 1.1754944e-38, %v508_v42  ;;  %vm507_vm15 = vcmp.eq.f32.partialorder %v506_v43, 8.507059e+37 }
 0xe1a   :  { %v774_v36 = vpop.eup %773 }
 0xe1b   :  { %v498_v37 = vmul.f32 %v774_v36, %v496_v35  ;;  %vm503_vm12 = vweird.f32 %v774_v36 }
 0xe1c   :  { %vm504_vm14 = vmor %vm502_vm13, %vm503_vm12 }
 0xe1d   :  { %v499_v39 = vsub.f32 1.0, %v498_v37 }
 0xe1f   :  { %v500_v40 = vmul.f32 %v774_v36, %v499_v39 }
 0xe21   :  { %v501_v41 = vadd.f32 %v774_v36, %v500_v40 }
 0xe23   :  { %v505_v45 = vsel %vm504_vm14, %v774_v36, %v501_v41 }
 0xe24   :  { %v510_v48 = vsel %vm507_vm15, %v509_v46, %v505_v45 }
 0xe25   :  { %v524_v54 = vsub.f32 1.0, %v510_v48  ;;  %v530_v56 = vmul.f32 %v510_v48, %v471_v26 }
 0xe7b   :  { %v515_v47 = vpop.permute.xlu1 %514 }
 0xe7c   :  { %v517_v49 = vmul.f32 %v515_v47, %v510_v48 }
 0xe7e   :  { %519 = vrot.lane.b32.xlu2 %v517_v49, %s783_s12 }
 0xed8   :  { %v520_v51 = vpop.permute.xlu2 %519 }
 0xed9   :  { %v522_v52 = vadd.f32 %v520_v51, %v89_v0 }
 0xedb   :  { %775 = vtanh.f32 %v522_v52 }
 0xee1   :  { %v776_v53 = vpop.eup %775 }
 0xee2   :  { %526 = vrot.lane.b32.xlu0 %v776_v53, %s785_s3 }
 0xf54   :  { %v527_v55 = vpop.permute.xlu0 %526 }
 0xf55   :  { %v529_v57 = vmul.f32 %v527_v55, %v524_v54 }
 0xf57   :  { %v966_v58 = vadd.f32 %v530_v56, %v529_v57 }
 0xf59   :  { %v532_v59 = vpack.c.bf16 %v966_v58, %v966_v58 }
 0xf5b   :  { %534 = vrot.lane.b32.xlu1 %v532_v59, %s785_s3 }
 0xf63   :  { %608 = vrot.lane.b32.xlu1 %v592_v60, %s785_s3 }
 0xf6b   :  { %612 = vrot.lane.b32.xlu1 %v594_v61, %s785_s3 }
 0xfcd   :  { %v535_v1 = vpop.permute.xlu1 %534 }
 0xfce   :  { %710 = vmatmul.msk.bf16.vlgmr.msrb.gmra.mxu2 %vm110_vm5, %v535_v1 }
 0xfd5   :  { %v609_v38 = vpop.permute.xlu1 %608 }
 0xfd6   :  { %720 = vmatmul.msk.bf16.vlgmr.msra.gmra.mxu3 %vm110_vm5, %v609_v38 }
 0xfdd   :  { %v613_v33 = vpop.permute.xlu1 %612 }
0x1051   :  { %v548_v11 = vpop.f32.mrf.mxu2 }
0x1052   :  { %v572_v50 = vadd.f32 %v548_v11, %v860_v8  ;;  %v90_v8 = vpop.f32.mrf.mxu0 }
0x1053   :  { %v91_v10 = vadd.f32 %v867_v12, %v90_v8 }
0x1054   :  { %574 = vrot.lane.b32.xlu2 %v572_v50, %s783_s12 }
0x1055   :  { %v552_v13 = vadd.f32 %v548_v11, %v91_v10 }
0x1057   :  { %v711_v14 = vmul.f32 -1.442695, %v552_v13 }
0x1059   :  { %v550_v3 = vpop.f32.mrf.mxu2  ;;  %v649_v5 = vpop.f32.mrf.mxu3  ;;  %777 = vpow2.f32 %v711_v14 }
0x105a   :  { %v650_v6 = vadd.f32 %v989_v2, %v649_v5 }
0x105c   :  { %669 = vst.msk [vmem:[%s1050_s7] sm:$0xff] %vm51_vm0, %v650_v6 }
0x105f   :  { %v778_v15 = vpop.eup %777 }
0x1060   :  { %v556_v17 = vadd.f32 1.0, %v778_v15 }
0x1061   :  { %v651_v7 = vpop.f32.mrf.mxu3 }
0x1062   :  { %v652_v9 = vadd.f32 %v989_v2, %v651_v7  ;;  %779 = vrcp.f32 %v556_v17  ;;  %v568_v23 = vand.u32 2147483648, %v556_v17  ;;  %vm562_vm2 = vweird.f32 %v556_v17 }
0x1063   :  { %v566_v24 = vand.u32 2147483647, %v556_v17 }
0x1064   :  { %670 = vst.msk [vmem:[%s1050_s7 + $0x8] sm:$0xff] %vm51_vm0, %v652_v9  ;;  %v569_v26 = vor.u32 1.1754944e-38, %v568_v23 }
0x1065   :  { %vm567_vm4 = vcmp.eq.f32.partialorder %v566_v24, 8.507059e+37 }
0x1068   :  { %v780_v18 = vpop.eup %779 }
0x1069   :  { %v558_v19 = vmul.f32 %v780_v18, %v556_v17  ;;  %vm563_vm1 = vweird.f32 %v780_v18 }
0x106a   :  { %vm564_vm3 = vmor %vm562_vm2, %vm563_vm1 }
0x106b   :  { %v559_v20 = vsub.f32 1.0, %v558_v19 }
0x106d   :  { %v560_v21 = vmul.f32 %v780_v18, %v559_v20 }
0x106f   :  { %v561_v22 = vadd.f32 %v780_v18, %v560_v21 }
0x1071   :  { %v565_v25 = vsel %vm564_vm3, %v780_v18, %v561_v22 }
0x1072   :  { %v570_v27 = vsel %vm567_vm4, %v569_v26, %v565_v25 }
0x1073   :  { %v584_v4 = vsub.f32 1.0, %v570_v27  ;;  %v590_v35 = vmul.f32 %v570_v27, %v966_v58 }
0x10ae   :  { %v575_v12 = vpop.permute.xlu2 %574 }
0x10af   :  { %v577_v28 = vmul.f32 %v575_v12, %v570_v27 }
0x10b1   :  { %579 = vrot.lane.b32.xlu0 %v577_v28, %s783_s12 }
0x10b9   :  { %610 = vrot.lane.b32.xlu0 %v593_v29, %s785_s3 }
0x1123   :  { %v580_v30 = vpop.permute.xlu0 %579 }
0x1124   :  { %v582_v31 = vadd.f32 %v580_v30, %v91_v10 }
0x1126   :  { %781 = vtanh.f32 %v582_v31 }
0x112b   :  { %v611_v32 = vpop.permute.xlu0 %610 }
0x112c   :  { %v782_v0 = vpop.eup %781  ;;  %721 = vmatmul.msk.bf16.gmra.mxu3 %vm110_vm5, %v611_v32 }
0x112d   :  { %586 = vrot.lane.b32.xlu2 %v782_v0, %s785_s3 }
0x113c   :  { %722 = vmatmul.msk.bf16.gmra.mxu3 %vm110_vm5, %v613_v33 }
0x1187   :  { %v587_v34 = vpop.permute.xlu2 %586 }
0x1188   :  { %v589_v36 = vmul.f32 %v587_v34, %v584_v4 }
0x118a   :  { %v591_v44 = vadd.f32 %v590_v35, %v589_v36 }
0x118c   :  { %v595_v16 = vpack.c.bf16 %v591_v44, %v966_v58 }
0x118e   :  { %614 = vrot.lane.b32.xlu2 %v595_v16, %s785_s3 }
0x11af   :  { %v654_v37 = vpop.f32.mrf.mxu3 }
0x11b0   :  { %v655_v39 = vadd.f32 %v989_v2, %v654_v37 }
0x11b2   :  { %671 = vst.msk [vmem:[%s1050_s7 + $0x10] sm:$0xff] %vm51_vm0, %v655_v39 }
0x11b7   :  { %v656_v40 = vpop.f32.mrf.mxu3 }
0x11b8   :  { %v657_v41 = vadd.f32 %v989_v2, %v656_v40 }
0x11ba   :  { %672 = vst.msk [vmem:[%s1050_s7 + $0x18] sm:$0xff] %vm51_vm0, %v657_v41 }
0x11bf   :  { %v659_v42 = vpop.f32.mrf.mxu3 }
0x11c0   :  { %v660_v43 = vadd.f32 %v989_v2, %v659_v42 }
0x11c2   :  { %673 = vst.msk [vmem:[%s1050_s7 + $0x20] sm:$0xff] %vm51_vm0, %v660_v43 }
0x11c7   :  { %v661_v45 = vpop.f32.mrf.mxu3 }
0x11c8   :  { %v662_v46 = vadd.f32 %v989_v2, %v661_v45 }
0x11ca   :  { %674 = vst.msk [vmem:[%s1050_s7 + $0x28] sm:$0xff] %vm51_vm0, %v662_v46 }
0x11e8   :  { %v615_v47 = vpop.permute.xlu2 %614 }
0x11e9   :  { %723 = vmatmul.msk.bf16.gmra.mxu3 %vm110_vm5, %v615_v47 }
0x126c   :  { %v664_v48 = vpop.f32.mrf.mxu3 }
0x126d   :  { %v665_v49 = vadd.f32 %v989_v2, %v664_v48 }
0x126f   :  { %675 = vst.msk [vmem:[%s1050_s7 + $0x30] sm:$0xff] %vm51_vm0, %v665_v49 }
0x1274   :  { %v666_v51 = vpop.f32.mrf.mxu3 }
0x1275   :  { %v667_v52 = vadd.f32 %v989_v2, %v666_v51 }
0x1277   :  { %676 = vst.msk [vmem:[%s1050_s7 + $0x38] sm:$0xff] %vm51_vm0, %v667_v52 }

</bundles_post_ra>
